<compile_context>
chip_gen: v7x
topology: tpu7x:2x2x1
jax: 0.10.0
libtpu: 0.0.40
codegen_flags: <defaults>
</compile_context>

<pallas_src>
import jax
import jax.numpy as jnp
from jax.experimental import pallas as pl
from jax.experimental.pallas import tpu as pltpu

# ----- config.* from the PyTorch module (small synthetic sizes) ---------------
ENCODE_LAYER = 16                     # L  (conv input "height" = seq length)
HIDDEN_SIZE = 32                      # H  (conv input "width"  = embedding dim)
FILTER_SIZES = (2, 3, 4)              # len == 3, so torch.cat dim=3 is the last dim
NUM_FILTERS = 4                       # F
N_CLASS = 3
NUM_FILTER_TOTAL = NUM_FILTERS * len(FILTER_SIZES)
BATCH = 2

# ----- fused-kernel geometry ---------------------------------------------------
FS_MAX = max(FILTER_SIZES)                          # 4
T_MAX = ENCODE_LAYER - min(FILTER_SIZES) + 1        # 15 (largest valid conv length)
T_PAD = ((T_MAX + 7) // 8) * 8                      # 16 (sublane-aligned time rows)
K_IM2COL = FS_MAX * HIDDEN_SIZE                     # 128 (full MXU contraction edge)
NFP = 128                                           # lane-dense padded feature/class width
NEG_INF = -1e30


def _textcnn_kernel(x_ref, w_ref, add_ref, bcls_ref, o_ref):
    """conv(im2col matmul) -> +bias/mask -> ReLU -> max-pool over time -> classifier."""
    n_rows = x_ref.shape[0]                         # B * T_PAD (static)
    b = n_rows // T_PAD

    # One fused conv matmul: [B*T_PAD, 128] @ [128, 128] (all filter banks at once).
    scores = jnp.dot(x_ref[...], w_ref[:K_IM2COL, :],
                     preferred_element_type=jnp.float32)        # [B*T_PAD, NFP]

    # Conv bias where (t, filter) is valid, -1e30 otherwise; ReLU zeroes invalid rows.
    h = jnp.maximum(scores + add_ref[...], 0.0)                 # [B*T_PAD, NFP]

    # MaxPool2d((T_i, 1)) for every filter bank == max over time per batch element.
    pooled = jnp.max(h.reshape(b, T_PAD, NFP), axis=1)          # [B, NFP]

    # Classifier (weights live in rows K_IM2COL.. of the same slab), lane-dense output.
    out = jnp.dot(pooled, w_ref[K_IM2COL:, :],
                  preferred_element_type=jnp.float32) + bcls_ref[...]
    o_ref[...] = out.astype(o_ref.dtype)                        # [B, NFP]


def textcnn_forward(x, conv_ws, conv_bs, wl, bl):
    """x: [B, L, H].  conv_ws[i]: [F, fs_i, H] (PyTorch layout, channel dim squeezed).
    conv_bs[i]: [F].  wl: [N_CLASS, F_total].  bl: [N_CLASS].  Returns [B, N_CLASS]."""
    B, L, H = x.shape

    # --- im2col slab: every time step carries a window of FS_MAX rows (zero pad at end).
    pad_rows = T_PAD + FS_MAX - 1 - L
    x_pad = jnp.pad(x, ((0, 0), (0, pad_rows), (0, 0)))
    windows = jnp.stack([x_pad[:, r:r + T_PAD, :] for r in range(FS_MAX)], axis=2)
    x_slab = windows.reshape(B * T_PAD, K_IM2COL)               # [B*T_PAD, 128]

    # --- combined weight slab: rows [0, K)   = conv banks (filter i -> cols i*F..(i+1)*F,
    #                                            rows r*H..(r+1)*H for r < fs_i, else 0)
    #                            rows [K, K+NFP) = zero-padded classifier weight.
    w_all = jnp.zeros((K_IM2COL + NFP, NFP), jnp.float32)
    for i, (w, fs) in enumerate(zip(conv_ws, FILTER_SIZES)):
        w_rt = jnp.transpose(w, (1, 2, 0)).reshape(fs * H, NUM_FILTERS)   # [fs*H, F]
        w_all = w_all.at[:fs * H, i * NUM_FILTERS:(i + 1) * NUM_FILTERS].set(w_rt)
    w_all = w_all.at[K_IM2COL:K_IM2COL + NUM_FILTER_TOTAL, :N_CLASS].set(
        jnp.transpose(wl, (1, 0)))

    # --- additive slab: conv bias for valid (t, filter) positions, -1e30 for invalid
    #     time rows (t >= L - fs_i + 1, incl. the padded T_PAD rows); 0 in padded columns.
    add = jnp.zeros((T_PAD, NFP), jnp.float32)
    t_idx = jnp.arange(T_PAD)[:, None]
    for i, (bias, fs) in enumerate(zip(conv_bs, FILTER_SIZES)):
        valid_t = L - fs + 1
        col = jnp.where(t_idx < valid_t, bias[None, :], NEG_INF)          # [T_PAD, F]
        add = add.at[:, i * NUM_FILTERS:(i + 1) * NUM_FILTERS].set(col)
    add_slab = jnp.tile(add, (B, 1))                            # [B*T_PAD, NFP]

    # --- lane-dense classifier bias row.
    bcls = jnp.zeros((1, NFP), jnp.float32).at[0, :N_CLASS].set(bl)

    vmem = pl.BlockSpec(memory_space=pltpu.MemorySpace.VMEM)
    out = pl.pallas_call(
        _textcnn_kernel,
        out_shape=jax.ShapeDtypeStruct((B, NFP), jnp.float32),
        in_specs=[vmem, vmem, vmem, vmem],
        out_specs=vmem,
    )(x_slab, w_all, add_slab, bcls)
    return out[:, :N_CLASS]


def textcnn_reference(x, conv_ws, conv_bs, wl, bl):
    """Pure-JAX reference mirroring the PyTorch forward pass."""
    pooled = []
    for w, b, fs in zip(conv_ws, conv_bs, FILTER_SIZES):
        T = ENCODE_LAYER - fs + 1
        windows = jnp.stack([x[:, r:r + T, :] for r in range(fs)], axis=2)  # [B,T,fs,H]
        scores = jnp.einsum('btrh,frh->btf', windows, w) + b[None, None, :]
        pooled.append(jnp.max(jax.nn.relu(scores), axis=1))                  # [B, F]
    h_pool = jnp.concatenate(pooled, axis=-1)                                # [B, F_total]
    return h_pool @ wl.T + bl


if __name__ == "__main__":
    key = jax.random.PRNGKey(0)
    keys = jax.random.split(key, 2 + 2 * len(FILTER_SIZES) + 2)

    x = jax.random.normal(keys[0], (BATCH, ENCODE_LAYER, HIDDEN_SIZE), jnp.float32)

    conv_ws, conv_bs = [], []
    for i, fs in enumerate(FILTER_SIZES):
        conv_ws.append(0.1 * jax.random.normal(keys[1 + 2 * i],
                                               (NUM_FILTERS, fs, HIDDEN_SIZE), jnp.float32))
        conv_bs.append(0.1 * jax.random.normal(keys[2 + 2 * i],
                                               (NUM_FILTERS,), jnp.float32))
    wl = 0.1 * jax.random.normal(keys[-2], (N_CLASS, NUM_FILTER_TOTAL), jnp.float32)
    bl = 0.1 * jax.random.normal(keys[-1], (N_CLASS,), jnp.float32)
    # Note: the PyTorch module also defines self.bias = ones(n_class), but it is never
    # used in forward(), so it is intentionally omitted here.

    out = jax.block_until_ready(textcnn_forward(x, conv_ws, conv_bs, wl, bl))
    ref = jax.block_until_ready(textcnn_reference(x, conv_ws, conv_bs, wl, bl))

    assert out.shape == (BATCH, N_CLASS), out.shape
    assert jnp.allclose(out, ref, atol=1e-5, rtol=1e-5), (out, ref)
    print("KERNEL_OK")
</pallas_src>

<mosaic_0001>
module attributes {stable_mosaic.version = 11 : i64} {
  func.func @_textcnn_kernel(%arg0: memref<32x128xf32, #tpu.memory_space<vmem>>, %arg1: memref<256x128xf32, #tpu.memory_space<vmem>>, %arg2: memref<32x128xf32, #tpu.memory_space<vmem>>, %arg3: memref<1x128xf32, #tpu.memory_space<vmem>>, %arg4: memref<2x128xf32, #tpu.memory_space<vmem>>) attributes {dimension_semantics = [], scalar_prefetch = 0 : i64, scratch_operands = 0 : i64, tpu.core_type = #tpu.core_type<tc>} {
    %c0 = arith.constant 0 : index
    %c0_0 = arith.constant 0 : index
    %0 = vector.load %arg0[%c0, %c0_0] : memref<32x128xf32, #tpu.memory_space<vmem>>, vector<32x128xf32>
    %c0_1 = arith.constant 0 : index
    %c0_2 = arith.constant 0 : index
    %1 = vector.load %arg1[%c0_1, %c0_2] : memref<256x128xf32, #tpu.memory_space<vmem>>, vector<128x128xf32>
    %cst = arith.constant dense<0.000000e+00> : vector<32x128xf32>
    %2 = tpu.matmul %0, %1, %cst {dimension_numbers = #tpu.dot_dimension_numbers<[1], [0], [0], [1], [0, 0, 1, 1], [], []>} : vector<32x128xf32>, vector<128x128xf32>, vector<32x128xf32> -> vector<32x128xf32>
    %c0_3 = arith.constant 0 : index
    %c0_4 = arith.constant 0 : index
    %3 = vector.load %arg2[%c0_3, %c0_4] : memref<32x128xf32, #tpu.memory_space<vmem>>, vector<32x128xf32>
    %4 = arith.addf %2, %3 : vector<32x128xf32>
    %cst_5 = arith.constant 0.000000e+00 : f32
    %5 = vector.broadcast %cst_5 : f32 to vector<32x128xf32>
    %6 = arith.maximumf %4, %5 : vector<32x128xf32>
    %7 = vector.shape_cast %6 : vector<32x128xf32> to vector<2x16x128xf32>
    %cst_6 = arith.constant dense<0xFF800000> : vector<2x128xf32>
    %8 = vector.multi_reduction <maximumf>, %7, %cst_6 [1] : vector<2x16x128xf32> to vector<2x128xf32>
    %c128 = arith.constant 128 : index
    %c0_7 = arith.constant 0 : index
    %9 = vector.load %arg1[%c128, %c0_7] : memref<256x128xf32, #tpu.memory_space<vmem>>, vector<128x128xf32>
    %cst_8 = arith.constant dense<0.000000e+00> : vector<2x128xf32>
    %10 = tpu.matmul %8, %9, %cst_8 {dimension_numbers = #tpu.dot_dimension_numbers<[1], [0], [0], [1], [0, 0, 1, 1], [], []>} : vector<2x128xf32>, vector<128x128xf32>, vector<2x128xf32> -> vector<2x128xf32>
    %c0_9 = arith.constant 0 : index
    %c0_10 = arith.constant 0 : index
    %11 = vector.load %arg3[%c0_9, %c0_10] : memref<1x128xf32, #tpu.memory_space<vmem>>, vector<1x128xf32>
    %12 = vector.broadcast %11 : vector<1x128xf32> to vector<2x128xf32>
    %13 = arith.addf %10, %12 : vector<2x128xf32>
    %c0_11 = arith.constant 0 : index
    %c0_12 = arith.constant 0 : index
    %14 = vector.load %arg4[%c0_11, %c0_12] : memref<2x128xf32, #tpu.memory_space<vmem>>, vector<2x128xf32>
    tpu.vector_store %arg4[%c0_11, %c0_12], %13 {strides = array<i32>} : memref<2x128xf32, #tpu.memory_space<vmem>>, vector<2x128xf32>,
    return
  }
}

</mosaic_0001>

<bundles_post_ra>
// kernel: tpu_custom_call.1
= control target key start
LH: loop header
LB: loop body
LE: loop exit
PB: predicated region body
PF: predicated region fallthrough
CT: control target
= control target key end

     0   :  { %9 = vsyncpa [#allocation3], 0  ;;  %s680_s0 = inlined_call_operand.hbm [shape: f32[32,128], index: 0, kind: input, shape index: {}]   ;;  %s681_s1 = inlined_call_operand.hbm [shape: f32[256,128], index: 1, kind: input, shape index: {}]   ;;  %s682_s2 = inlined_call_operand.hbm [shape: f32[32,128], index: 2, kind: input, shape index: {}]   ;;  %s683_s3 = inlined_call_operand.vmem [shape: f32[1,128], index: 3, kind: input, shape index: {}]   ;;  %s684_s4 = inlined_call_operand.hbm [shape: f32[2,128], index: 4, kind: output, shape index: {}]  }
   0x1   :  { %10 = vsyncpa [#allocation6], 0 }
   0x2   :  { %11 = vsyncpa [#allocation4], 0  ;;  %s571_s15 = smov [#allocation5]   ;;  %s572_s17 = smov [#allocation2]  }
   0x3   :  { %s29_s16 = sshll.u32 %s571_s15, 4  ;;  %s17_s18 = sshll.u32 %s572_s17, 4  ;;  %s30_s16 = int_to_ptr.vmem [resolvable:$true] %s29_s16  ;;  %s605_s18 = int_to_ptr.vmem [resolvable:$true] %s17_s18 }
   0x4   :  { %s477_s21 = scalar_lea.hbm %s681_s1, 4096 }
   0x5   :  { %p478_p0 = scmp.ne.s32.totalorder %s681_s1, %s477_s21  ;;  %p481_p1 = scmp.lt.u32.totalorder %s477_s21, %s681_s1 }
   0x7   :  { %p483_p2 = pnand %p481_p1, %p478_p0 }
   0x9   :  { %486 = shalt.err (!%p483_p2)
}
   0xa   :  { %s487_s26 = scalar_lea.vmem %s30_s16, 4096  ;;  %p492_p4 = scmp.lt.s32.totalorder %s30_s16, %s30_s16 }
   0xb   :  { %p488_p3 = scmp.ne.s32.totalorder %s30_s16, %s487_s26  ;;  %p493_p5 = scmp.lt.s32.totalorder %s487_s26, %s487_s26 }
   0xd   :  { %p494_p6 = por %p493_p5, %p492_p4 }
   0xf   :  { %p495_p7 = pnand %p494_p6, %p488_p3 }
  0x11   :  { %498 = shalt.err (!%p495_p7)
}
  0x12   :  { %s573_s27 = smov 128   ;;  %s574_s28 = smov 8  }
  0x13   :  { %35 = dma.hbm_to_vmem [thread:$0]  %s681_s1, 4096, %s30_s16, [#allocation6], %s573_s27, %s573_s27, %s574_s28  }
  0x14   :  { %s499_s7 = scalar_lea.hbm %s680_s0, 512 }
  0x15   :  { %p500_p8 = scmp.ne.s32.totalorder %s680_s0, %s499_s7  ;;  %p503_p9 = scmp.lt.u32.totalorder %s499_s7, %s680_s0 }
  0x17   :  { %p505_p10 = pnand %p503_p9, %p500_p8 }
  0x19   :  { %508 = shalt.err (!%p505_p10)
}
  0x1a   :  { %s509_s12 = scalar_lea.vmem %s605_s18, 512  ;;  %p514_p12 = scmp.lt.s32.totalorder %s605_s18, %s605_s18 }
  0x1b   :  { %p510_p11 = scmp.ne.s32.totalorder %s605_s18, %s509_s12  ;;  %p515_p13 = scmp.lt.s32.totalorder %s509_s12, %s509_s12 }
  0x1d   :  { %p516_p0 = por %p515_p13, %p514_p12 }
  0x1f   :  { %p517_p1 = pnand %p516_p0, %p510_p11 }
  0x21   :  { %520 = shalt.err (!%p517_p1)
}
  0x22   :  { %23 = dma.hbm_to_vmem [thread:$0]  %s680_s0, 512, %s605_s18, [#allocation3], %s573_s27, %s573_s27, %s574_s28  }
  0x23   :  { %s575_s14 = smov [#allocation7]   ;;  %s521_s19 = scalar_lea.hbm %s682_s2, 512 }
  0x24   :  { %s41_s15 = sshll.u32 %s575_s14, 4  ;;  %p522_p2 = scmp.ne.s32.totalorder %s682_s2, %s521_s19  ;;  %s42_s15 = int_to_ptr.vmem [resolvable:$true] %s41_s15 }
  0x25   :  { %p525_p3 = scmp.lt.u32.totalorder %s521_s19, %s682_s2 }
  0x27   :  { %p527_p4 = pnand %p525_p3, %p522_p2 }
  0x29   :  { %530 = shalt.err (!%p527_p4)
}
  0x2a   :  { %s531_s24 = scalar_lea.vmem %s42_s15, 512  ;;  %p536_p6 = scmp.lt.s32.totalorder %s42_s15, %s42_s15 }
  0x2b   :  { %p532_p5 = scmp.ne.s32.totalorder %s42_s15, %s531_s24  ;;  %p537_p7 = scmp.lt.s32.totalorder %s531_s24, %s531_s24 }
  0x2d   :  { %p538_p8 = por %p537_p7, %p536_p6 }
  0x2f   :  { %p539_p9 = pnand %p538_p8, %p532_p5 }
  0x31   :  { %542 = shalt.err (!%p539_p9)
}
  0x32   :  { %47 = dma.hbm_to_vmem [thread:$0]  %s682_s2, 512, %s42_s15, [#allocation6], %s573_s27, %s573_s27, %s574_s28  }
  0x33   :  { %565 = dma.done.wait [#allocation3], 512  }
  0x34   :  { %566 = vsyncadd [#allocation3], 4294966784 }
  0x35   :  { %567 = dma.done.wait [#allocation6], 4608  }
  0x36   :  { %568 = vsyncadd [#allocation6], 4294962688  ;;  %v576_v0 = vmov 0.0|0.0   ;;  %v63_v1 = vld [vmem:[#allocation5] sm:$0xff]  ;;  %v64_v2 = vld [vmem:[#allocation5 + $0x8] sm:$0xff]  ;;  %vm577_vm0 = vmmov 0  }
  0x37   :  { %444 = vmatprep.subr.bf16.mxu1 %v576_v0  ;;  %v65_v3 = vld [vmem:[#allocation5 + $0x10] sm:$0xff]  ;;  %v412_v4 = vpack.c.bf16 %v64_v2, %v63_v1  ;;  %v66_v5 = vld [vmem:[#allocation5 + $0x18] sm:$0xff]  ;;  %v67_v7 = vld [vmem:[#allocation5 + $0x20] sm:$0xff]  ;;  %v578_v53 = vmov 0.0   ;;  %vm211_vm1 = vcmask 1041409   ;;  %s579_s26 = smov [#allocation8]  }
  0x38   :  { %v416_v6 = vpack.c.bf16 %v66_v5, %v65_v3  ;;  %v68_v8 = vld [vmem:[#allocation5 + $0x28] sm:$0xff]  ;;  %v59_v10 = vld [vmem:[#allocation2] sm:$0xff]  ;;  %v69_v11 = vld [vmem:[#allocation5 + $0x30] sm:$0xff]  ;;  %409 = vmatprep.mubr.msk.f32.mxu1 %vm577_vm0, %v578_v53  ;;  %s291_s27 = sshll.u32 %s579_s26, 4  ;;  %s292_s27 = int_to_ptr.vmem [resolvable:$true] %s291_s27 }
  0x39   :  { %413 = vmatprep.subr.bf16.mxu0 %v412_v4  ;;  %v420_v9 = vpack.c.bf16 %v68_v8, %v67_v7  ;;  %v70_v12 = vld [vmem:[#allocation5 + $0x38] sm:$0xff]  ;;  %371 = vmatprep.mubr.f32.mxu0 %v59_v10  ;;  %v186_v13 = vld [vmem:[#allocation5 + $0x80] sm:$0xff]  ;;  %v187_v14 = vld [vmem:[#allocation5 + $0x88] sm:$0xff]  ;;  %s543_s28 = scalar_lea.vmem %s292_s27, 32  ;;  %p548_p11 = scmp.lt.s32.totalorder %s292_s27, %s292_s27 }
  0x3a   :  { %415 = vmatpush3.bf16.msra.mxu0 %v412_v4  ;;  %v188_v15 = vld [vmem:[#allocation5 + $0x90] sm:$0xff]  ;;  %v189_v16 = vld [vmem:[#allocation5 + $0x98] sm:$0xff]  ;;  %v445_v17 = vpack.c.bf16 %v187_v14, %v186_v13  ;;  %v424_v18 = vpack.c.bf16 %v70_v12, %v69_v11  ;;  %v71_v19 = vld [vmem:[#allocation5 + $0x40] sm:$0xff]  ;;  %p544_p10 = scmp.ne.s32.totalorder %s292_s27, %s543_s28  ;;  %p549_p12 = scmp.lt.s32.totalorder %s543_s28, %s543_s28 }
  0x3b   :  { %417 = vmatprep.subr.bf16.mxu0 %v416_v6  ;;  %v72_v20 = vld [vmem:[#allocation5 + $0x48] sm:$0xff]  ;;  %v448_v21 = vpack.c.bf16 %v189_v16, %v188_v15  ;;  %v73_v23 = vld [vmem:[#allocation5 + $0x50] sm:$0xff]  ;;  %v74_v24 = vld [vmem:[#allocation5 + $0x58] sm:$0xff] }
  0x3c   :  { %446 = vmatpush3.bf16.msra.mxu1 %v445_v17  ;;  %v428_v22 = vpack.c.bf16 %v72_v20, %v71_v19  ;;  %v432_v25 = vpack.c.bf16 %v74_v24, %v73_v23  ;;  %v75_v26 = vld [vmem:[#allocation5 + $0x60] sm:$0xff]  ;;  %v76_v27 = vld [vmem:[#allocation5 + $0x68] sm:$0xff]  ;;  %v77_v29 = vld [vmem:[#allocation5 + $0x70] sm:$0xff]  ;;  %p550_p13 = por %p549_p12, %p548_p11 }
  0x3d   :  { %447 = vmatprep.subr.bf16.mxu1 %v576_v0  ;;  %v436_v28 = vpack.c.bf16 %v76_v27, %v75_v26  ;;  %v78_v30 = vld [vmem:[#allocation5 + $0x78] sm:$0xff]  ;;  %v60_v32 = vld [vmem:[#allocation2 + $0x8] sm:$0xff]  ;;  %v61_v33 = vld [vmem:[#allocation2 + $0x10] sm:$0xff] }
  0x3e   :  { %419 = vmatpush3.bf16.msra.mxu0 %v416_v6  ;;  %v440_v31 = vpack.c.bf16 %v78_v30, %v77_v29  ;;  %v62_v34 = vld [vmem:[#allocation2 + $0x18] sm:$0xff]  ;;  %v190_v35 = vld [vmem:[#allocation5 + $0xa0] sm:$0xff]  ;;  %v191_v36 = vld [vmem:[#allocation5 + $0xa8] sm:$0xff]  ;;  %p551_p0 = pnand %p550_p13, %p544_p10 }
  0x3f   :  { %421 = vmatprep.subr.bf16.mxu0 %v420_v9  ;;  %v451_v37 = vpack.c.bf16 %v191_v36, %v190_v35  ;;  %v192_v38 = vld [vmem:[#allocation5 + $0xb0] sm:$0xff]  ;;  %v193_v39 = vld [vmem:[#allocation5 + $0xb8] sm:$0xff]  ;;  %v194_v41 = vld [vmem:[#allocation5 + $0xc0] sm:$0xff] }
  0x40   :  { %449 = vmatpush3.bf16.msra.mxu1 %v448_v21  ;;  %v454_v40 = vpack.c.bf16 %v193_v39, %v192_v38  ;;  %v195_v42 = vld [vmem:[#allocation5 + $0xc8] sm:$0xff]  ;;  %v196_v44 = vld [vmem:[#allocation5 + $0xd0] sm:$0xff]  ;;  %v197_v45 = vld [vmem:[#allocation5 + $0xd8] sm:$0xff] }
  0x41   :  { %450 = vmatprep.subr.bf16.mxu1 %v576_v0  ;;  %v457_v43 = vpack.c.bf16 %v195_v42, %v194_v41  ;;  %v460_v46 = vpack.c.bf16 %v197_v45, %v196_v44  ;;  %v198_v47 = vld [vmem:[#allocation5 + $0xe0] sm:$0xff]  ;;  %v199_v48 = vld [vmem:[#allocation5 + $0xe8] sm:$0xff]  ;;  %v200_v50 = vld [vmem:[#allocation5 + $0xf0] sm:$0xff] }
  0x42   :  { %423 = vmatpush3.bf16.msra.mxu0 %v420_v9  ;;  %v463_v49 = vpack.c.bf16 %v199_v48, %v198_v47  ;;  %v201_v51 = vld [vmem:[#allocation5 + $0xf8] sm:$0xff]  ;;  %v80_v54 = vld [vmem:[#allocation7 + $0x8] sm:$0xff]  ;;  %v79_v55 = vld [vmem:[#allocation7] sm:$0xff] }
  0x43   :  { %425 = vmatprep.subr.bf16.mxu0 %v424_v18  ;;  %v466_v52 = vpack.c.bf16 %v201_v51, %v200_v50  ;;  %v82_v60 = vld [vmem:[#allocation7 + $0x18] sm:$0xff]  ;;  %v81_v62 = vld [vmem:[#allocation7 + $0x10] sm:$0xff]  ;;  %v301_v21 = vld [vmem:[%s683_s3] ss:$0 sm:$0xff] }
  0x44   :  { %452 = vmatpush3.bf16.msra.mxu1 %v451_v37 }
  0x45   :  { %453 = vmatprep.subr.bf16.mxu1 %v576_v0 }
  0x46   :  { %427 = vmatpush3.bf16.msra.mxu0 %v424_v18 }
  0x47   :  { %429 = vmatprep.subr.bf16.mxu0 %v428_v22 }
  0x48   :  { %455 = vmatpush3.bf16.msra.mxu1 %v454_v40 }
  0x49   :  { %456 = vmatprep.subr.bf16.mxu1 %v576_v0 }
  0x4a   :  { %431 = vmatpush3.bf16.msra.mxu0 %v428_v22 }
  0x4b   :  { %433 = vmatprep.subr.bf16.mxu0 %v432_v25 }
  0x4c   :  { %458 = vmatpush3.bf16.msra.mxu1 %v457_v43 }
  0x4d   :  { %459 = vmatprep.subr.bf16.mxu1 %v576_v0 }
  0x4e   :  { %435 = vmatpush3.bf16.msra.mxu0 %v432_v25 }
  0x4f   :  { %437 = vmatprep.subr.bf16.mxu0 %v436_v28 }
  0x50   :  { %461 = vmatpush3.bf16.msra.mxu1 %v460_v46 }
  0x51   :  { %462 = vmatprep.subr.bf16.mxu1 %v576_v0 }
  0x52   :  { %439 = vmatpush3.bf16.msra.mxu0 %v436_v28 }
  0x53   :  { %441 = vmatprep.subr.bf16.mxu0 %v440_v31 }
  0x54   :  { %464 = vmatpush3.bf16.msra.mxu1 %v463_v49 }
  0x55   :  { %465 = vmatprep.subr.bf16.mxu1 %v576_v0 }
  0x56   :  { %443 = vmatpush3.bf16.msra.mxu0 %v440_v31 }
  0x58   :  { %467 = vmatpush3.bf16.msra.mxu1 %v466_v52 }
  0x59   :  { %372 = vmatmul.mubr.f32.vlgmr.msra.gmra.mrb[0].mxu0 %v60_v32 }
  0x5a   :  { %374 = vmatprep.mubr.f32.mxu0 %v61_v33 }
  0x5d   :  { %375 = vmatmul.mubr.f32.gmra.mrb[2].mxu0 %v62_v34 }
 0x12c   :  { %v373_v56 = vpop.f32.mrb[0].mxu0 }
 0x12d   :  { %v155_v57 = vadd.f32 %v373_v56, %v80_v54  ;;  %v149_v58 = vpop.f32.mrb[1].mxu0 }
 0x12e   :  { %v150_v59 = vadd.f32 %v149_v58, %v79_v55 }
 0x12f   :  { %v169_v61 = vmax.f32 %v155_v57, 0.0 }
 0x130   :  { %v168_v63 = vmax.f32 %v150_v59, 0.0  ;;  %v376_v1 = vpop.f32.mrb[2].mxu0 }
 0x131   :  { %v165_v2 = vadd.f32 %v376_v1, %v82_v60  ;;  %v159_v3 = vpop.f32.mrb[3].mxu0 }
 0x132   :  { %v172_v4 = vmax.f32 %v168_v63, %v169_v61  ;;  %v160_v0 = vadd.f32 %v159_v3, %v81_v62 }
 0x133   :  { %v171_v5 = vmax.f32 %v165_v2, 0.0 }
 0x134   :  { %v173_v6 = vrot.slane %v172_v4, 4  ;;  %v170_v7 = vmax.f32 %v160_v0, 0.0 }
 0x136   :  { %v174_v8 = vmax.f32 %v172_v4, %v173_v6  ;;  %v179_v9 = vmax.f32 %v170_v7, %v171_v5 }
 0x138   :  { %v175_v10 = vrot.slane %v174_v8, 2  ;;  %v180_v11 = vrot.slane %v179_v9, 4 }
 0x13a   :  { %v176_v12 = vmax.f32 %v174_v8, %v175_v10  ;;  %v181_v13 = vmax.f32 %v179_v9, %v180_v11 }
 0x13c   :  { %v182_v14 = vrot.slane %v181_v13, 2  ;;  %v177_v16 = vrot.slane %v176_v12, 1 }
 0x13e   :  { %v183_v15 = vmax.f32 %v181_v13, %v182_v14  ;;  %v178_v18 = vmax.f32 %v176_v12, %v177_v16 }
 0x140   :  { %v184_v17 = vrot.slane %v183_v15, 1 }
 0x142   :  { %v185_v19 = vmax.f32 %v183_v15, %v184_v17 }
 0x144   :  { %v212_v20 = vsel %vm211_vm1, %v185_v19, %v178_v18 }
 0x145   :  { %410 = vmatmul.mubr.f32.vlgmr.msra.gmra.mrb[0].mxu1 %v212_v20 }
 0x218   :  { %v280_v22 = vpop.f32.mrb[0].mxu1 }
 0x219   :  { %v281_v23 = vadd.f32 %v301_v21, %v280_v22  ;;  %v411_v24 = vpop.f32.mrb[1].mxu1 }
 0x21b   :  { %284 = vst [vmem:[#allocation8] sm:$0x3] %v281_v23 }
 0x21c   :  { %554 = shalt.err (!%p551_p0)
}
 0x21d   :  { %s555_s5 = scalar_lea.hbm %s684_s4, 32 }
 0x21e   :  { %p556_p1 = scmp.ne.s32.totalorder %s684_s4, %s555_s5  ;;  %p559_p2 = scmp.lt.u32.totalorder %s555_s5, %s684_s4 }
 0x220   :  { %p561_p3 = pnand %p559_p2, %p556_p1 }
 0x222   :  { %564 = shalt.err (!%p561_p3)
}
 0x223   :  { %294 = dma.vmem_to_hbm [thread:$0]  %s292_s27, 32, %s684_s4, [#allocation4]  }
 0x224   :  { %569 = dma.done.wait [#allocation4], 32  }
 0x225   :  { %570 = vsyncadd [#allocation4], 4294967264 }
 0x226   :  { %298 = vsyncpa [#allocation3], 1 }
 0x227   :  { %299 = vsyncpa [#allocation6], 1 }
 0x228   :  { %300 = vsyncpa [#allocation4], 1 }

</bundles_post_ra>
